<compile_context>
chip_gen: v6e
topology: v6e:2x2x1
jax: 0.10.0
libtpu: 0.0.40
codegen_flags: <defaults>
</compile_context>

<pallas_src>
import jax
import jax.numpy as jnp
from jax import lax
from jax.experimental import pallas as pl
from jax.experimental.pallas import tpu as pltpu


def _round_up(x, m):
    return ((x + m - 1) // m) * m


def _cdiv(a, b):
    return -(-a // b)


def _make_argmax_kernel(C, TC, nan_as_max):
    """Kernel factory: C/TC are static so ragged-edge masking compiles out
    when C is a multiple of TC."""
    ragged_c = (C % TC) != 0

    def kernel(x_ref, out_ref, m_ref, idx_ref):
        # x_ref:   (TB, TC) logits tile (f32 or bf16, native dtype) in VMEM
        # out_ref: (TB, 1)  int32 predicted class index (written on last k)
        # m_ref:   (TB, 1)  f32  running row maximum (scratch)
        # idx_ref: (TB, 1)  i32  running first argmax index (scratch)
        k = pl.program_id(1)
        num_k = pl.num_programs(1)

        @pl.when(k == 0)
        def _init():
            m_ref[...] = jnp.full_like(m_ref, -jnp.inf)
            idx_ref[...] = jnp.zeros_like(idx_ref)

        x = x_ref[...]                       # keep native dtype (bf16 or f32)
        tb, tc = x.shape

        if nan_as_max:
            # Torch's max propagates NaN and returns its index; treat NaN as
            # +inf so the first NaN wins.  Compiled out when off.
            x = jnp.where(jnp.isnan(x), jnp.inf, x)

        # Tile-local column iota (global offset added AFTER the reduce).
        col = lax.broadcasted_iota(jnp.int32, (tb, tc), 1)

        if ragged_c:
            # Last class tile reads past C (unspecified values); mask them to
            # -inf so they can never win.  For non-last tiles limit >= TC and
            # the select is a no-op.
            limit = C - k * TC               # scalar
            x = jnp.where(col < limit, x, -jnp.inf)

        tile_max = jnp.max(x, axis=1, keepdims=True)            # (TB, 1)
        sentinel = jnp.int32(tc)             # > any valid local column index
        local_idx = jnp.min(jnp.where(x == tile_max, col, sentinel),
                            axis=1, keepdims=True)              # (TB, 1)
        tile_idx = local_idx + k * TC        # global index, (TB, 1) only

        tile_max_f32 = tile_max.astype(jnp.float32)
        running_m = m_ref[...]
        # Strictly-greater merge: on ties the earlier (lower-k) tile keeps the
        # index, preserving torch's first-occurrence semantics across tiles.
        take_new = tile_max_f32 > running_m
        idx_ref[...] = jnp.where(take_new, tile_idx, idx_ref[...])
        m_ref[...] = jnp.maximum(running_m, tile_max_f32)

        @pl.when(k == num_k - 1)
        def _finalize():
            out_ref[...] = idx_ref[...]

    return kernel


def predict(logits, *, tb_max=256, tc_max=2048, nan_as_max=False):
    """Equivalent of PytorchClassificationModel.predict on precomputed logits.

    logits: (B, C) float array (f32 or bf16 used natively; other dtypes are
    upcast to f32). Returns (B,) int32 argmax indices with first-occurrence
    tie-breaking (matching torch.max(x, 1)[1]).

    nan_as_max=False assumes finite logits (normal classifier case); set True
    to get torch-like "first NaN wins" behavior at 2 extra VPU ops/element.
    """
    B, C = logits.shape

    if logits.dtype not in (jnp.dtype(jnp.float32), jnp.dtype(jnp.bfloat16)):
        logits = logits.astype(jnp.float32)

    # Sanitize tile caps to hardware alignment (sublane 8, lane 128).
    tb_max = max(8, (tb_max // 8) * 8)
    tc_max = max(128, (tc_max // 128) * 128)

    # Batch tile: multiple of 8, <= B, and small enough that the "parallel"
    # batch axis has >= 2 tiles (keeps both v7x TensorCores busy).  For tiny
    # batches use a single full-extent block (allowed when == array dim).
    if B <= 8:
        TB = B
    else:
        TB = min(tb_max, _round_up(_cdiv(B, 2), 8))

    # Class tile: multiple of 128 and <= C; the ragged remainder (if any) is
    # a partial last tile masked inside the kernel.  No padding, no dead reads.
    if C <= 128:
        TC = C
    else:
        TC = min(tc_max, (C // 128) * 128)

    grid = (_cdiv(B, TB), _cdiv(C, TC))

    itemsize = jnp.dtype(logits.dtype).itemsize
    cost = pl.CostEstimate(
        flops=4 * B * C,
        transcendentals=0,
        bytes_accessed=B * C * itemsize + B * 4,
    )

    out = pl.pallas_call(
        _make_argmax_kernel(C, TC, nan_as_max),
        out_shape=jax.ShapeDtypeStruct((B, 1), jnp.int32),
        grid_spec=pltpu.PrefetchScalarGridSpec(
            num_scalar_prefetch=0,
            grid=grid,
            in_specs=[pl.BlockSpec((TB, TC), lambda i, k: (i, k))],
            out_specs=pl.BlockSpec((TB, 1), lambda i, k: (i, 0)),
            scratch_shapes=[pltpu.VMEM((TB, 1), jnp.float32),
                            pltpu.VMEM((TB, 1), jnp.int32)],
        ),
        compiler_params=pltpu.CompilerParams(
            # batch axis parallel (sharded across TCs on v7x), class axis is
            # the sequential reduction axis.
            dimension_semantics=("parallel", "arbitrary"),
            # Tiles are <= 2 MiB double-buffered; 32 MiB is safe on
            # v5e/v6e (128 MiB) and v7x (64 MiB).
            vmem_limit_bytes=32 * 1024 * 1024,
        ),
        cost_estimate=cost,
    )(logits)
    return out[:, 0]   # shape (B,), matching torch.max(output, 1)[1]


if __name__ == "__main__":
    key = jax.random.PRNGKey(0)
    k1, k2, k3 = jax.random.split(key, 3)

    # Case 1: tiny f32 logits (single tile, dims equal full extents).
    B1, C1 = 8, 16
    logits1 = jax.random.normal(k1, (B1, C1), dtype=jnp.float32)
    pred1 = predict(logits1)
    jax.block_until_ready(pred1)
    ref1 = jnp.argmax(logits1, axis=1).astype(jnp.int32)
    assert pred1.shape == (B1,)
    assert bool(jnp.all(pred1 == ref1))

    # Case 2: bf16 logits, ragged class axis (300 % 128 != 0), small forced
    # tiles so multi-tile batch grid + streamed class accumulator + in-kernel
    # edge masking all run.
    B2, C2 = 24, 300
    logits2 = jax.random.normal(k2, (B2, C2), dtype=jnp.float32).astype(jnp.bfloat16)
    pred2 = predict(logits2, tb_max=8, tc_max=128)
    jax.block_until_ready(pred2)
    ref2 = jnp.argmax(logits2, axis=1).astype(jnp.int32)
    assert pred2.shape == (B2,)
    assert bool(jnp.all(pred2 == ref2))

    # Case 3: ragged batch AND ragged class axis with default tile caps
    # (partial last batch tile -> discarded OOB output rows; partial last
    # class tile -> -inf masking).
    B3, C3 = 10, 1000
    logits3 = jax.random.normal(k3, (B3, C3), dtype=jnp.float32)
    pred3 = predict(logits3)
    jax.block_until_ready(pred3)
    ref3 = jnp.argmax(logits3, axis=1).astype(jnp.int32)
    assert pred3.shape == (B3,)
    assert bool(jnp.all(pred3 == ref3))

    # Case 4: opt-in NaN handling (torch.max returns the first NaN index).
    row = [1.0, 2.0, float("nan"), 0.5, -1.0, 0.0, 0.25, 2.0]
    logits4 = jnp.array([row] * 8, dtype=jnp.float32)
    pred4 = predict(logits4, nan_as_max=True)
    jax.block_until_ready(pred4)
    assert bool(jnp.all(pred4 == 2))

    print("KERNEL_OK")
</pallas_src>

<mosaic_0001>
module attributes {stable_mosaic.version = 11 : i64} {
  func.func @kernel(%arg0: i32, %arg1: i32, %arg2: memref<8x16xf32, #tpu.memory_space<vmem>>, %arg3: memref<8x1xi32, #tpu.memory_space<vmem>>, %arg4: memref<8x1xf32, #tpu.memory_space<vmem>>, %arg5: memref<8x1xi32, #tpu.memory_space<vmem>>) attributes {dimension_semantics = [#tpu.dimension_semantics<parallel>, #tpu.dimension_semantics<arbitrary>], iteration_bounds = array<i64: 1, 1>, scalar_prefetch = 0 : i64, scratch_operands = 2 : i64, tpu.core_type = #tpu.core_type<tc>, window_params = [{transform_indices = @transform_0, window_bounds = array<i64: 8, 16>}, {transform_indices = @transform_1, window_bounds = array<i64: 8, 1>}]} {
    %c0_i32 = arith.constant 0 : i32
    %0 = arith.cmpi eq, %arg1, %c0_i32 : i32
    %1 = arith.extui %0 : i1 to i32
    %c0_i32_0 = arith.constant 0 : i32
    %2 = arith.cmpi ne, %1, %c0_i32_0 : i32
    scf.if %2 {
      %cst_14 = arith.constant 0xFF800000 : f32
      %26 = vector.broadcast %cst_14 : f32 to vector<8x1xf32>
      %c0_15 = arith.constant 0 : index
      %c0_16 = arith.constant 0 : index
      %27 = vector.load %arg4[%c0_15, %c0_16] : memref<8x1xf32, #tpu.memory_space<vmem>>, vector<8x1xf32>
      tpu.vector_store %arg4[%c0_15, %c0_16], %26 {strides = array<i32>} : memref<8x1xf32, #tpu.memory_space<vmem>>, vector<8x1xf32>,
      %c0_i32_17 = arith.constant 0 : i32
      %28 = vector.broadcast %c0_i32_17 : i32 to vector<8x1xi32>
      %c0_18 = arith.constant 0 : index
      %c0_19 = arith.constant 0 : index
      %29 = vector.load %arg5[%c0_18, %c0_19] : memref<8x1xi32, #tpu.memory_space<vmem>>, vector<8x1xi32>
      tpu.vector_store %arg5[%c0_18, %c0_19], %28 {strides = array<i32>} : memref<8x1xi32, #tpu.memory_space<vmem>>, vector<8x1xi32>,
    } else {
    }
    %c0 = arith.constant 0 : index
    %c0_1 = arith.constant 0 : index
    %3 = vector.load %arg2[%c0, %c0_1] : memref<8x16xf32, #tpu.memory_space<vmem>>, vector<8x16xf32>
    %4 = tpu.iota {dimensions = array<i32: 1>} : vector<8x16xi32>
    %cst = arith.constant dense<0xFF800000> : vector<8xf32>
    %5 = vector.multi_reduction <maximumf>, %3, %cst [1] : vector<8x16xf32> to vector<8xf32>
    %6 = vector.shape_cast %5 : vector<8xf32> to vector<8x1xf32>
    %7 = vector.broadcast %6 : vector<8x1xf32> to vector<8x16xf32>
    %8 = arith.cmpf oeq, %3, %7 : vector<8x16xf32>
    %c16_i32 = arith.constant 16 : i32
    %9 = vector.broadcast %c16_i32 : i32 to vector<8x16xi32>
    %10 = arith.select %8, %4, %9 : vector<8x16xi1>, vector<8x16xi32>
    %cst_2 = arith.constant dense<2147483647> : vector<8xi32>
    %11 = vector.multi_reduction <minsi>, %10, %cst_2 [1] : vector<8x16xi32> to vector<8xi32>
    %12 = vector.shape_cast %11 : vector<8xi32> to vector<8x1xi32>
    %c16_i32_3 = arith.constant 16 : i32
    %13 = arith.muli %arg1, %c16_i32_3 : i32
    %14 = vector.broadcast %13 : i32 to vector<8x1xi32>
    %15 = arith.addi %12, %14 : vector<8x1xi32>
    %c0_4 = arith.constant 0 : index
    %c0_5 = arith.constant 0 : index
    %16 = vector.load %arg4[%c0_4, %c0_5] : memref<8x1xf32, #tpu.memory_space<vmem>>, vector<8x1xf32>
    %17 = arith.cmpf ogt, %6, %16 : vector<8x1xf32>
    %c0_6 = arith.constant 0 : index
    %c0_7 = arith.constant 0 : index
    %18 = vector.load %arg5[%c0_6, %c0_7] : memref<8x1xi32, #tpu.memory_space<vmem>>, vector<8x1xi32>
    %19 = arith.select %17, %15, %18 : vector<8x1xi1>, vector<8x1xi32>
    %c0_8 = arith.constant 0 : index
    %c0_9 = arith.constant 0 : index
    %20 = vector.load %arg5[%c0_8, %c0_9] : memref<8x1xi32, #tpu.memory_space<vmem>>, vector<8x1xi32>
    tpu.vector_store %arg5[%c0_8, %c0_9], %19 {strides = array<i32>} : memref<8x1xi32, #tpu.memory_space<vmem>>, vector<8x1xi32>,
    %21 = arith.maximumf %16, %6 : vector<8x1xf32>
    %c0_10 = arith.constant 0 : index
    %c0_11 = arith.constant 0 : index
    %22 = vector.load %arg4[%c0_10, %c0_11] : memref<8x1xf32, #tpu.memory_space<vmem>>, vector<8x1xf32>
    tpu.vector_store %arg4[%c0_10, %c0_11], %21 {strides = array<i32>} : memref<8x1xf32, #tpu.memory_space<vmem>>, vector<8x1xf32>,
    %c0_i32_12 = arith.constant 0 : i32
    %23 = arith.cmpi eq, %arg1, %c0_i32_12 : i32
    %24 = arith.extui %23 : i1 to i32
    %c0_i32_13 = arith.constant 0 : i32
    %25 = arith.cmpi ne, %24, %c0_i32_13 : i32
    scf.if %25 {
      %c0_14 = arith.constant 0 : index
      %c0_15 = arith.constant 0 : index
      %26 = vector.load %arg5[%c0_14, %c0_15] : memref<8x1xi32, #tpu.memory_space<vmem>>, vector<8x1xi32>
      %c0_16 = arith.constant 0 : index
      %c0_17 = arith.constant 0 : index
      %27 = vector.load %arg3[%c0_16, %c0_17] : memref<8x1xi32, #tpu.memory_space<vmem>>, vector<8x1xi32>
      tpu.vector_store %arg3[%c0_16, %c0_17], %26 {strides = array<i32>} : memref<8x1xi32, #tpu.memory_space<vmem>>, vector<8x1xi32>,
    } else {
    }
    return
  }
  func.func @transform_0(%arg0: i32, %arg1: i32) -> (i32, i32) {
    %c0_i32 = arith.constant 0 : i32
    return %arg0, %arg1 : i32, i32
  }
  func.func @transform_1(%arg0: i32, %arg1: i32) -> (i32, i32) {
    %c0_i32 = arith.constant 0 : i32
    %c0_i32_0 = arith.constant 0 : i32
    return %arg0, %c0_i32 : i32, i32
  }
}

</mosaic_0001>

<bundles_post_ra>
// kernel: tpu_custom_call.1
= control target key start
LH: loop header
LB: loop body
LE: loop exit
PB: predicated region body
PF: predicated region fallthrough
CT: control target
= control target key end

     0   :  { %6 = vsyncpa [#allocation5], 0  ;;  %s97_s6 = smov [#allocation4]   ;;  %s121_s0 = inlined_call_operand.hbm [shape: f32[8,16], index: 0, kind: input, shape index: {}]   ;;  %s122_s1 = inlined_call_operand.vmem [shape: s32[8,1], index: 1, kind: output, shape index: {}]  }
   0x1   :  { %s13_s7 = sshll.u32 %s97_s6, 4  ;;  %s14_s7 = int_to_ptr.vmem [resolvable:$true] %s13_s7 }
   0x2   :  { %s83_s8 = scalar_lea.vmem %s14_s7, 128  ;;  %p88_p1 = scmp.lt.s32.totalorder %s14_s7, %s14_s7 }
   0x3   :  { %p84_p0 = scmp.ne.s32.totalorder %s14_s7, %s83_s8  ;;  %p89_p2 = scmp.lt.s32.totalorder %s83_s8, %s83_s8 }
   0x5   :  { %p90_p3 = por %p89_p2, %p88_p1 }
   0x7   :  { %p91_p4 = pnand %p90_p3, %p84_p0 }
   0x9   :  { %94 = shalt.err (!%p91_p4)
}
   0xa   :  { %16 = dma.hbm_to_vmem [thread:$0]  %s121_s0, 128, %s14_s7, [#allocation5]  }
   0xb   :  { %95 = dma.done.wait [#allocation5], 128  }
   0xc   :  { %96 = vsyncadd [#allocation5], 4294967168  ;;  %vm24_vm0 = vcmask 7168   ;;  %v98_v0 = vmov -inf   ;;  %vm30_vm1 = vcmask 130048   ;;  %v27_v1 = vld [vmem:[#allocation4] sm:$0xff]  ;;  %v28_v3 = vlaneseq }
   0xd   :  { %25 = vst.msk [vmem:[#allocation2] sm:$0xff] %vm24_vm0, %v98_v0  ;;  %v31_v2 = vsel %vm30_vm1, %v27_v1, -inf  ;;  %v99_v12 = vmov 0  }
   0xe   :  { %32 = vmax.xlane.f32.xlu0 %v31_v2  ;;  %v29_v5 = vand.u32 127, %v28_v3  ;;  %26 = vst.msk [vmem:[#allocation3] sm:$0xff] %vm24_vm0, %v99_v12 }
  0x14   :  { %v54_v4 = vld [vmem:[#allocation2] sm:$0xff] }
  0x15   :  { %v56_v21 = vld [vmem:[#allocation3] sm:$0xff] }
  0x97   :  { %v33_v6 = vpop.xlane.xlu0 %32 }
  0x98   :  { %vm34_vm2 = vcmp.eq.f32.partialorder %v27_v1, %v33_v6  ;;  %v60_v7 = vmax.f32 %v54_v4, %v33_v6  ;;  %vm55_vm4 = vcmp.gt.f32.partialorder %v33_v6, %v54_v4 }
  0x99   :  { %v35_v8 = vsel %vm34_vm2, %v29_v5, 16 }
  0x9a   :  { %61 = vst.msk [vmem:[#allocation2] sm:$0xff] %vm24_vm0, %v60_v7  ;;  %v36_v9 = vsel %vm30_vm1, %v35_v8, 2147483647 }
  0x9b   :  { %v38_v10 = vshra.s32 %v36_v9, 16  ;;  %v37_v13 = vand.u32 65535, %v36_v9 }
  0x9d   :  { %v40_v11 = vcvt.s32.f32 %v38_v10  ;;  %v39_v15 = vcvt.s32.f32 %v37_v13 }
  0x9f   :  { %41 = vmin.xlane.f32.xlu0 %v40_v11 }
 0x128   :  { %v42_v14 = vpop.xlane.xlu0 %41 }
 0x129   :  { %vm43_vm3 = vcmp.eq.f32.partialorder %v40_v11, %v42_v14  ;;  %v48_v17 = vcvt.f32.s32 %v42_v14 }
 0x12a   :  { %v44_v16 = vsel %vm43_vm3, %v39_v15, inf }
 0x12b   :  { %45 = vmin.xlane.f32.xlu1 %v44_v16  ;;  %v49_v19 = vshll.u32 %v48_v17, 16 }
 0x1b4   :  { %v46_v18 = vpop.xlane.xlu1 %45 }
 0x1b5   :  { %v47_v20 = vcvt.f32.s32 %v46_v18 }
 0x1b7   :  { %v50_v22 = vadd.s32 %v49_v19, %v47_v20 }
 0x1b9   :  { %v57_v23 = vsel %vm55_vm4, %v50_v22, %v56_v21 }
 0x1ba   :  { %59 = vst.msk [vmem:[#allocation3] sm:$0xff] %vm24_vm0, %v57_v23 }
 0x1c1   :  { %v65_v24 = vld [vmem:[#allocation3] sm:$0xff] }
 0x1c2   :  { %66 = vst.msk [vmem:[%s122_s1] sm:$0xff] %vm24_vm0, %v65_v24 }
 0x1c3   :  { %71 = vsyncpa [#allocation5], 1 }

</bundles_post_ra>
